<compile_context>
chip_gen: v6e
topology: v6e:2x2x1
jax: 0.10.0
libtpu: 0.0.40
codegen_flags: <defaults>
</compile_context>

<pallas_src>
import math
import functools

import numpy as np
import jax
import jax.numpy as jnp
from jax import lax
from jax.experimental import pallas as pl
from jax.experimental.pallas import tpu as pltpu


# ----------------------------- host-side helpers ------------------------------

def duplicate_interleave(m):
    # (R, C) -> (R, 2C): each column repeated twice, interleaved (torch repeat trick).
    return jnp.repeat(m, 2, axis=1)


def xpos_half_tables(seq_len, head_dim, scale_base=512.0):
    """Half-width xpos tables matching XPOS.forward with offset=0.

    Returns cos_q, sin_q, cos_k, sin_k, each (S, head_dim // 2); the Q tables
    have the xpos scale folded in, the K tables the downscale (1/scale).
    """
    half = head_dim // 2
    scale_vec = (jnp.arange(0, head_dim, 2, dtype=jnp.float32) + 0.4 * head_dim) / (1.4 * head_dim)
    min_pos = -(seq_len) // 2                       # python floor-div, offset = 0
    pos = jnp.arange(min_pos, min_pos + seq_len, dtype=jnp.float32)
    scale_mat = scale_vec[None, :] ** (pos / scale_base)[:, None]        # (S, half)

    inv_freq = 1.0 / (10000.0 ** (jnp.arange(0, half, dtype=jnp.float32) / half))
    sinusoid = jnp.arange(seq_len, dtype=jnp.float32)[:, None] * inv_freq[None, :]
    sin, cos = jnp.sin(sinusoid), jnp.cos(sinusoid)

    return (cos * scale_mat, sin * scale_mat,
            cos / scale_mat, sin / scale_mat)


# --------------------------------- kernel ------------------------------------

def msr_kernel(xq_ref, xkv_ref,
               wqe_ref, wqo_ref, wke_ref, wko_ref, wv_ref, wg_ref, wo_ref,
               gnw_ref, gnb_ref, lgam_ref,
               cq_ref, sq_ref, ck_ref, sk_ref,
               o_ref,
               q1_scr, q2_scr, acc_scr, out_scr,
               *, tq, tk, eps):
    qi = pl.program_id(1)
    h = pl.program_id(2)
    kv = pl.program_id(3)
    n_heads = pl.num_programs(2)
    n_kv = pl.num_programs(3)

    # Zero the (tq, H) output accumulator once per (batch, q-tile).
    @pl.when((h == 0) & (kv == 0))
    def _():
        out_scr[...] = jnp.zeros_like(out_scr)

    # Once per (q-tile, head): project Q (bf16 MXU), apply xpos in f32, reset acc.
    # Even/odd weight halves + half-width tables express x*cos + rot2(x)*sin
    # without any lane shuffle:  q1 = qE*c - qO*s,  q2 = qO*c + qE*s.
    @pl.when(kv == 0)
    def _():
        xq = xq_ref[0].astype(jnp.bfloat16)
        qe = jnp.dot(xq, wqe_ref[0].astype(jnp.bfloat16),
                     preferred_element_type=jnp.float32)           # (tq, half)
        qo = jnp.dot(xq, wqo_ref[0].astype(jnp.bfloat16),
                     preferred_element_type=jnp.float32)
        c, s_ = cq_ref[...], sq_ref[...]
        q1_scr[...] = qe * c - qo * s_
        q2_scr[...] = qo * c + qe * s_
        acc_scr[...] = jnp.zeros_like(acc_scr)

    # Retention for this kv tile (skipped entirely for non-causal tiles).
    @pl.when(kv * tk <= qi * tq + (tq - 1))
    def _():
        xkv = xkv_ref[0].astype(jnp.bfloat16)
        ke = jnp.dot(xkv, wke_ref[0].astype(jnp.bfloat16),
                     preferred_element_type=jnp.float32)           # (tk, half)
        ko = jnp.dot(xkv, wko_ref[0].astype(jnp.bfloat16),
                     preferred_element_type=jnp.float32)
        c, s_ = ck_ref[...], sk_ref[...]
        k1 = ke * c - ko * s_
        k2 = ko * c + ke * s_
        v = jnp.dot(xkv, wv_ref[0].astype(jnp.bfloat16),
                    preferred_element_type=jnp.float32)            # (tk, hs)

        # scores = Q_xpos K_xpos^T = q1 k1^T + q2 k2^T   (bf16 MXU, f32 acc)
        dn = (((1,), (1,)), ((), ()))
        s = (lax.dot_general(q1_scr[...].astype(jnp.bfloat16), k1.astype(jnp.bfloat16),
                             dn, preferred_element_type=jnp.float32)
             + lax.dot_general(q2_scr[...].astype(jnp.bfloat16), k2.astype(jnp.bfloat16),
                               dn, preferred_element_type=jnp.float32))   # (tq, tk)

        # Decay block D[n, m] = gamma_h^(n-m) for n >= m, built in-kernel
        # (the (heads, S, S) tensor is never materialized or DMA'd).
        n = qi * tq + lax.broadcasted_iota(jnp.int32, (tq, tk), 0)
        m = kv * tk + lax.broadcasted_iota(jnp.int32, (tq, tk), 1)
        causal = n >= m
        log_gamma = lgam_ref[0]                                    # (1, 1)
        expo = jnp.where(causal, (n - m).astype(jnp.float32), 0.0) * log_gamma
        decay = jnp.where(causal, jnp.exp(expo), 0.0)

        ret = (s * decay).astype(jnp.bfloat16)
        acc_scr[...] += jnp.dot(ret, v.astype(jnp.bfloat16),
                                preferred_element_type=jnp.float32)

    # Per-head epilogue: GroupNorm (per head) + swish gate + fold into output.
    @pl.when(kv == n_kv - 1)
    def _():
        y = acc_scr[...]                                           # (tq, hs) f32
        mean = jnp.mean(y, axis=-1, keepdims=True)
        var = jnp.mean((y - mean) ** 2, axis=-1, keepdims=True)
        y = (y - mean) * lax.rsqrt(var + eps)
        y = y * gnw_ref[0] + gnb_ref[0]

        xq = xq_ref[0].astype(jnp.bfloat16)
        g = jnp.dot(xq, wg_ref[0].astype(jnp.bfloat16),
                    preferred_element_type=jnp.float32)            # (tq, hs)
        gated = (g * jax.nn.sigmoid(g)) * y
        out_scr[...] += jnp.dot(gated.astype(jnp.bfloat16),
                                wo_ref[0].astype(jnp.bfloat16),
                                preferred_element_type=jnp.float32)

    # One lane-dense (tq, H) store per (batch, q-tile).
    @pl.when((kv == n_kv - 1) & (h == n_heads - 1))
    def _():
        o_ref[0] = out_scr[...].astype(o_ref.dtype)


def multiscale_retention_pallas(x, params, heads, head_size, *, tq=None, tk=None):
    b, s, hdim = x.shape
    hs = head_size
    half = hs // 2
    assert hdim == heads * hs and hs % 2 == 0
    (wqe, wqo, wke, wko, wv_h, wg_h, wo_h, gnw_h, gnb_h, lgam,
     cos_q, sin_q, cos_k, sin_k) = params

    tq = min(s, 128) if tq is None else tq
    tk = min(s, 128) if tk is None else tk
    assert s % tq == 0 and s % tk == 0
    n_q, n_kv = s // tq, s // tk

    kernel = functools.partial(msr_kernel, tq=tq, tk=tk, eps=1e-5)

    in_specs = [
        pl.BlockSpec((1, tq, hdim), lambda b_, qi, h, kv: (b_, qi, 0)),   # X (q rows)
        pl.BlockSpec((1, tk, hdim), lambda b_, qi, h, kv: (b_, kv, 0)),   # X (kv rows)
        pl.BlockSpec((1, hdim, half), lambda b_, qi, h, kv: (h, 0, 0)),   # W_Q even cols
        pl.BlockSpec((1, hdim, half), lambda b_, qi, h, kv: (h, 0, 0)),   # W_Q odd cols
        pl.BlockSpec((1, hdim, half), lambda b_, qi, h, kv: (h, 0, 0)),   # W_K even cols
        pl.BlockSpec((1, hdim, half), lambda b_, qi, h, kv: (h, 0, 0)),   # W_K odd cols
        pl.BlockSpec((1, hdim, hs),   lambda b_, qi, h, kv: (h, 0, 0)),   # W_V[head]
        pl.BlockSpec((1, hdim, hs),   lambda b_, qi, h, kv: (h, 0, 0)),   # W_G[:, head]
        pl.BlockSpec((1, hs, hdim),   lambda b_, qi, h, kv: (h, 0, 0)),   # W_O[head, :]
        pl.BlockSpec((1, 1, hs),      lambda b_, qi, h, kv: (h, 0, 0)),   # GN weight
        pl.BlockSpec((1, 1, hs),      lambda b_, qi, h, kv: (h, 0, 0)),   # GN bias
        pl.BlockSpec((1, 1, 1),       lambda b_, qi, h, kv: (h, 0, 0)),   # log(gamma_h)
        pl.BlockSpec((tq, half),      lambda b_, qi, h, kv: (qi, 0)),     # xpos cos (Q)
        pl.BlockSpec((tq, half),      lambda b_, qi, h, kv: (qi, 0)),     # xpos sin (Q)
        pl.BlockSpec((tk, half),      lambda b_, qi, h, kv: (kv, 0)),     # xpos cos (K)
        pl.BlockSpec((tk, half),      lambda b_, qi, h, kv: (kv, 0)),     # xpos sin (K)
    ]
    out_spec = pl.BlockSpec((1, tq, hdim), lambda b_, qi, h, kv: (b_, qi, 0))

    flops = 2 * b * heads * n_q * (
        tq * hdim * hs                      # Q projection (even+odd halves)
        + n_kv * 2 * tk * hdim * hs         # K and V projections
        + n_kv * 2 * tq * tk * hs           # Q K^T and (ret @ V)
        + 2 * tq * hdim * hs                # gate projection and W_O fold-in
    )
    transcendentals = b * heads * n_q * (n_kv * tq * tk + tq * hs)
    bytes_accessed = 4 * (3 * b * s * hdim + heads * (5 * hdim * hs))

    return pl.pallas_call(
        kernel,
        out_shape=jax.ShapeDtypeStruct((b, s, hdim), jnp.float32),
        grid_spec=pltpu.PrefetchScalarGridSpec(
            num_scalar_prefetch=0,
            grid=(b, n_q, heads, n_kv),
            in_specs=in_specs,
            out_specs=out_spec,
            scratch_shapes=[
                pltpu.VMEM((tq, half), jnp.float32),    # xpos-rotated Q, half 1
                pltpu.VMEM((tq, half), jnp.float32),    # xpos-rotated Q, half 2
                pltpu.VMEM((tq, hs), jnp.float32),      # retention accumulator (over kv)
                pltpu.VMEM((tq, hdim), jnp.float32),    # output accumulator (over heads)
            ],
        ),
        compiler_params=pltpu.CompilerParams(
            dimension_semantics=("parallel", "parallel", "arbitrary", "arbitrary"),
            vmem_limit_bytes=32 * 1024 * 1024,
        ),
        cost_estimate=pl.CostEstimate(
            flops=flops, transcendentals=transcendentals, bytes_accessed=bytes_accessed),
    )(x, x, wqe, wqo, wke, wko, wv_h, wg_h, wo_h, gnw_h, gnb_h, lgam,
      cos_q, sin_q, cos_k, sin_k)


# ---------------------------- pure-JAX reference ------------------------------

def rotate_every_two_jnp(t):
    t1 = t[..., 0::2]
    t2 = t[..., 1::2]
    return jnp.stack([-t2, t1], axis=-1).reshape(t.shape)


def decay_matrix(gamma, seq_len):
    n = jnp.arange(seq_len)[:, None]
    m = jnp.arange(seq_len)[None, :]
    return jnp.where(n >= m, gamma ** (n - m).astype(jnp.float32), 0.0).astype(jnp.float32)


def msr_reference(x, wq, wk, wv, wg, wo, gnw, gnb, heads, head_size, eps=1e-5):
    """Direct f32 port of MultiScaleRetention.forward (parallel representation)."""
    s = x.shape[1]
    ch, sh, chd, shd = xpos_half_tables(s, head_size)
    cos_q, sin_q = duplicate_interleave(ch), duplicate_interleave(sh)
    cos_k, sin_k = duplicate_interleave(chd), duplicate_interleave(shd)
    gammas = 1.0 - np.exp(np.linspace(math.log(1 / 32), math.log(1 / 512), heads))

    ys = []
    for h in range(heads):
        sl = slice(h * head_size, (h + 1) * head_size)
        q = x @ wq[:, sl]
        k = x @ wk[:, sl]
        v = x @ wv[:, sl]
        q = q * cos_q + rotate_every_two_jnp(q) * sin_q
        k = k * cos_k + rotate_every_two_jnp(k) * sin_k
        d = decay_matrix(float(gammas[h]), s)
        ret = jnp.einsum('bik,bjk->bij', q, k) * d[None]
        yh = jnp.einsum('bij,bjd->bid', ret, v)
        mean = jnp.mean(yh, axis=-1, keepdims=True)
        var = jnp.mean((yh - mean) ** 2, axis=-1, keepdims=True)
        yh = (yh - mean) / jnp.sqrt(var + eps)
        yh = yh * gnw[sl] + gnb[sl]
        ys.append(yh)
    y = jnp.concatenate(ys, axis=-1)
    g = x @ wg
    return ((g * jax.nn.sigmoid(g)) * y) @ wo


# ----------------------------------- main -------------------------------------

if __name__ == "__main__":
    B, S, H, HEADS = 2, 8, 32, 4
    HS = H // HEADS                     # head_size; double_v_dim=False -> v_dim == H

    key = jax.random.PRNGKey(0)
    keys = jax.random.split(key, 8)

    # Per-head projection weights (randn / hidden_size), stacked along columns.
    wq = jnp.concatenate(
        [jax.random.normal(k, (H, HS), jnp.float32) / H for k in jax.random.split(keys[0], HEADS)], axis=1)
    wk = jnp.concatenate(
        [jax.random.normal(k, (H, HS), jnp.float32) / H for k in jax.random.split(keys[1], HEADS)], axis=1)
    wv = jnp.concatenate(
        [jax.random.normal(k, (H, HS), jnp.float32) / H for k in jax.random.split(keys[2], HEADS)], axis=1)
    wg = jax.random.normal(keys[3], (H, H), jnp.float32) / H
    wo = jax.random.normal(keys[4], (H, H), jnp.float32) / H
    gn_w = jnp.ones((H,), jnp.float32)     # GroupNorm affine defaults
    gn_b = jnp.zeros((H,), jnp.float32)

    x = jax.random.normal(keys[5], (B, S, H), jnp.float32)

    # ---- kernel-side parameter layout ----------------------------------------
    to_heads_cols = lambda w: w.reshape(H, HEADS, HS).transpose(1, 0, 2)   # (heads, H, hs)
    wq_h = to_heads_cols(wq)
    wk_h = to_heads_cols(wk)
    wqe, wqo = wq_h[..., 0::2], wq_h[..., 1::2]     # even / odd rotary pair halves
    wke, wko = wk_h[..., 0::2], wk_h[..., 1::2]
    wv_h = to_heads_cols(wv)
    wg_h = to_heads_cols(wg)
    wo_h = wo.reshape(HEADS, HS, H)
    gnw_h = gn_w.reshape(HEADS, 1, HS)
    gnb_h = gn_b.reshape(HEADS, 1, HS)

    gammas = 1.0 - np.exp(np.linspace(math.log(1 / 32), math.log(1 / 512), HEADS))
    lgam = jnp.asarray(np.log(gammas), jnp.float32).reshape(HEADS, 1, 1)

    cos_q, sin_q, cos_k, sin_k = xpos_half_tables(S, HS)        # each (S, HS//2)

    params = (wqe, wqo, wke, wko, wv_h, wg_h, wo_h, gnw_h, gnb_h, lgam,
              cos_q, sin_q, cos_k, sin_k)

    out = multiscale_retention_pallas(x, params, HEADS, HS)
    out = jax.block_until_ready(out)

    ref = msr_reference(x, wq, wk, wv, wg, wo, gn_w, gn_b, HEADS, HS)
    assert out.shape == (B, S, H)
    err = float(jnp.max(jnp.abs(out - ref)))
    scale = float(jnp.max(jnp.abs(ref)))
    # bf16 MXU operands vs the f32 reference -> loose, scale-aware tolerance.
    assert err <= 8e-2 * scale + 5e-4, (err, scale)

    print("KERNEL_OK")
</pallas_src>

<mosaic_0001>
module attributes {stable_mosaic.version = 11 : i64} {
  func.func @msr_kernel(%arg0: i32, %arg1: i32, %arg2: i32, %arg3: i32, %arg4: memref<1x8x32xf32, #tpu.memory_space<vmem>>, %arg5: memref<1x8x32xf32, #tpu.memory_space<vmem>>, %arg6: memref<1x32x4xf32, #tpu.memory_space<vmem>>, %arg7: memref<1x32x4xf32, #tpu.memory_space<vmem>>, %arg8: memref<1x32x4xf32, #tpu.memory_space<vmem>>, %arg9: memref<1x32x4xf32, #tpu.memory_space<vmem>>, %arg10: memref<1x32x8xf32, #tpu.memory_space<vmem>>, %arg11: memref<1x32x8xf32, #tpu.memory_space<vmem>>, %arg12: memref<1x8x32xf32, #tpu.memory_space<vmem>>, %arg13: memref<1x1x8xf32, #tpu.memory_space<vmem>>, %arg14: memref<1x1x8xf32, #tpu.memory_space<vmem>>, %arg15: memref<1x1x1xf32, #tpu.memory_space<vmem>>, %arg16: memref<8x4xf32, #tpu.memory_space<vmem>>, %arg17: memref<8x4xf32, #tpu.memory_space<vmem>>, %arg18: memref<8x4xf32, #tpu.memory_space<vmem>>, %arg19: memref<8x4xf32, #tpu.memory_space<vmem>>, %arg20: memref<1x8x32xf32, #tpu.memory_space<vmem>>, %arg21: memref<8x4xf32, #tpu.memory_space<vmem>>, %arg22: memref<8x4xf32, #tpu.memory_space<vmem>>, %arg23: memref<8x8xf32, #tpu.memory_space<vmem>>, %arg24: memref<8x32xf32, #tpu.memory_space<vmem>>) attributes {dimension_semantics = [#tpu.dimension_semantics<parallel>, #tpu.dimension_semantics<parallel>, #tpu.dimension_semantics<arbitrary>, #tpu.dimension_semantics<arbitrary>], iteration_bounds = array<i64: 2, 1, 4, 1>, scalar_prefetch = 0 : i64, scratch_operands = 4 : i64, tpu.core_type = #tpu.core_type<tc>, window_params = [{transform_indices = @transform_0, window_bounds = array<i64: 1, 8, 32>}, {transform_indices = @transform_1, window_bounds = array<i64: 1, 8, 32>}, {transform_indices = @transform_2, window_bounds = array<i64: 1, 32, 4>}, {transform_indices = @transform_3, window_bounds = array<i64: 1, 32, 4>}, {transform_indices = @transform_4, window_bounds = array<i64: 1, 32, 4>}, {transform_indices = @transform_5, window_bounds = array<i64: 1, 32, 4>}, {transform_indices = @transform_6, window_bounds = array<i64: 1, 32, 8>}, {transform_indices = @transform_7, window_bounds = array<i64: 1, 32, 8>}, {transform_indices = @transform_8, window_bounds = array<i64: 1, 8, 32>}, {transform_indices = @transform_9, window_bounds = array<i64: 1, 1, 8>}, {transform_indices = @transform_10, window_bounds = array<i64: 1, 1, 8>}, {transform_indices = @transform_11, window_bounds = array<i64: 1, 1, 1>}, {transform_indices = @transform_12, window_bounds = array<i64: 8, 4>}, {transform_indices = @transform_13, window_bounds = array<i64: 8, 4>}, {transform_indices = @transform_14, window_bounds = array<i64: 8, 4>}, {transform_indices = @transform_15, window_bounds = array<i64: 8, 4>}, {transform_indices = @transform_16, window_bounds = array<i64: 1, 8, 32>}]} {
    %c0_i32 = arith.constant 0 : i32
    %0 = arith.cmpi eq, %arg2, %c0_i32 : i32
    %c0_i32_0 = arith.constant 0 : i32
    %1 = arith.cmpi eq, %arg3, %c0_i32_0 : i32
    %2 = arith.andi %0, %1 : i1
    %3 = arith.extui %2 : i1 to i32
    %c0_i32_1 = arith.constant 0 : i32
    %4 = arith.cmpi ne, %3, %c0_i32_1 : i32
    scf.if %4 {
      %cst = arith.constant 0.000000e+00 : f32
      %22 = vector.broadcast %cst : f32 to vector<8x32xf32>
      %c0 = arith.constant 0 : index
      %c0_10 = arith.constant 0 : index
      %23 = vector.load %arg24[%c0, %c0_10] : memref<8x32xf32, #tpu.memory_space<vmem>>, vector<8x32xf32>
      tpu.vector_store %arg24[%c0, %c0_10], %22 {strides = array<i32>} : memref<8x32xf32, #tpu.memory_space<vmem>>, vector<8x32xf32>,
    } else {
    }
    %c0_i32_2 = arith.constant 0 : i32
    %5 = arith.cmpi eq, %arg3, %c0_i32_2 : i32
    %6 = arith.extui %5 : i1 to i32
    %c0_i32_3 = arith.constant 0 : i32
    %7 = arith.cmpi ne, %6, %c0_i32_3 : i32
    scf.if %7 {
      %c0 = arith.constant 0 : index
      %c0_10 = arith.constant 0 : index
      %c0_11 = arith.constant 0 : index
      %22 = vector.load %arg4[%c0, %c0_10, %c0_11] : memref<1x8x32xf32, #tpu.memory_space<vmem>>, vector<1x8x32xf32>
      %23 = vector.shape_cast %22 : vector<1x8x32xf32> to vector<8x32xf32>
      %24 = arith.truncf %23 : vector<8x32xf32> to vector<8x32xbf16>
      %c0_12 = arith.constant 0 : index
      %c0_13 = arith.constant 0 : index
      %c0_14 = arith.constant 0 : index
      %25 = vector.load %arg6[%c0_12, %c0_13, %c0_14] : memref<1x32x4xf32, #tpu.memory_space<vmem>>, vector<1x32x4xf32>
      %26 = vector.shape_cast %25 : vector<1x32x4xf32> to vector<32x4xf32>
      %27 = arith.truncf %26 : vector<32x4xf32> to vector<32x4xbf16>
      %cst = arith.constant dense<0.000000e+00> : vector<8x4xf32>
      %28 = tpu.matmul %24, %27, %cst {dimension_numbers = #tpu.dot_dimension_numbers<[1], [0], [0], [1], [0, 0, 1, 1], [], []>} : vector<8x32xbf16>, vector<32x4xbf16>, vector<8x4xf32> -> vector<8x4xf32>
      %c0_15 = arith.constant 0 : index
      %c0_16 = arith.constant 0 : index
      %c0_17 = arith.constant 0 : index
      %29 = vector.load %arg7[%c0_15, %c0_16, %c0_17] : memref<1x32x4xf32, #tpu.memory_space<vmem>>, vector<1x32x4xf32>
      %30 = vector.shape_cast %29 : vector<1x32x4xf32> to vector<32x4xf32>
      %31 = arith.truncf %30 : vector<32x4xf32> to vector<32x4xbf16>
      %cst_18 = arith.constant dense<0.000000e+00> : vector<8x4xf32>
      %32 = tpu.matmul %24, %31, %cst_18 {dimension_numbers = #tpu.dot_dimension_numbers<[1], [0], [0], [1], [0, 0, 1, 1], [], []>} : vector<8x32xbf16>, vector<32x4xbf16>, vector<8x4xf32> -> vector<8x4xf32>
      %c0_19 = arith.constant 0 : index
      %c0_20 = arith.constant 0 : index
      %33 = vector.load %arg16[%c0_19, %c0_20] : memref<8x4xf32, #tpu.memory_space<vmem>>, vector<8x4xf32>
      %c0_21 = arith.constant 0 : index
      %c0_22 = arith.constant 0 : index
      %34 = vector.load %arg17[%c0_21, %c0_22] : memref<8x4xf32, #tpu.memory_space<vmem>>, vector<8x4xf32>
      %35 = arith.mulf %28, %33 : vector<8x4xf32>
      %36 = arith.mulf %32, %34 : vector<8x4xf32>
      %37 = arith.subf %35, %36 : vector<8x4xf32>
      %c0_23 = arith.constant 0 : index
      %c0_24 = arith.constant 0 : index
      %38 = vector.load %arg21[%c0_23, %c0_24] : memref<8x4xf32, #tpu.memory_space<vmem>>, vector<8x4xf32>
      tpu.vector_store %arg21[%c0_23, %c0_24], %37 {strides = array<i32>} : memref<8x4xf32, #tpu.memory_space<vmem>>, vector<8x4xf32>,
      %39 = arith.mulf %32, %33 : vector<8x4xf32>
      %40 = arith.mulf %28, %34 : vector<8x4xf32>
      %41 = arith.addf %39, %40 : vector<8x4xf32>
      %c0_25 = arith.constant 0 : index
      %c0_26 = arith.constant 0 : index
      %42 = vector.load %arg22[%c0_25, %c0_26] : memref<8x4xf32, #tpu.memory_space<vmem>>, vector<8x4xf32>
      tpu.vector_store %arg22[%c0_25, %c0_26], %41 {strides = array<i32>} : memref<8x4xf32, #tpu.memory_space<vmem>>, vector<8x4xf32>,
      %cst_27 = arith.constant 0.000000e+00 : f32
      %43 = vector.broadcast %cst_27 : f32 to vector<8x8xf32>
      %c0_28 = arith.constant 0 : index
      %c0_29 = arith.constant 0 : index
      %44 = vector.load %arg23[%c0_28, %c0_29] : memref<8x8xf32, #tpu.memory_space<vmem>>, vector<8x8xf32>
      tpu.vector_store %arg23[%c0_28, %c0_29], %43 {strides = array<i32>} : memref<8x8xf32, #tpu.memory_space<vmem>>, vector<8x8xf32>,
    } else {
    }
    %c8_i32 = arith.constant 8 : i32
    %8 = arith.muli %arg3, %c8_i32 : i32
    %c8_i32_4 = arith.constant 8 : i32
    %9 = arith.muli %arg1, %c8_i32_4 : i32
    %c7_i32 = arith.constant 7 : i32
    %10 = arith.addi %9, %c7_i32 : i32
    %11 = arith.cmpi sle, %8, %10 : i32
    %12 = arith.extui %11 : i1 to i32
    %c0_i32_5 = arith.constant 0 : i32
    %13 = arith.cmpi ne, %12, %c0_i32_5 : i32
    scf.if %13 {
      %c0 = arith.constant 0 : index
      %c0_10 = arith.constant 0 : index
      %c0_11 = arith.constant 0 : index
      %22 = vector.load %arg5[%c0, %c0_10, %c0_11] : memref<1x8x32xf32, #tpu.memory_space<vmem>>, vector<1x8x32xf32>
      %23 = vector.shape_cast %22 : vector<1x8x32xf32> to vector<8x32xf32>
      %24 = arith.truncf %23 : vector<8x32xf32> to vector<8x32xbf16>
      %c0_12 = arith.constant 0 : index
      %c0_13 = arith.constant 0 : index
      %c0_14 = arith.constant 0 : index
      %25 = vector.load %arg8[%c0_12, %c0_13, %c0_14] : memref<1x32x4xf32, #tpu.memory_space<vmem>>, vector<1x32x4xf32>
      %26 = vector.shape_cast %25 : vector<1x32x4xf32> to vector<32x4xf32>
      %27 = arith.truncf %26 : vector<32x4xf32> to vector<32x4xbf16>
      %cst = arith.constant dense<0.000000e+00> : vector<8x4xf32>
      %28 = tpu.matmul %24, %27, %cst {dimension_numbers = #tpu.dot_dimension_numbers<[1], [0], [0], [1], [0, 0, 1, 1], [], []>} : vector<8x32xbf16>, vector<32x4xbf16>, vector<8x4xf32> -> vector<8x4xf32>
      %c0_15 = arith.constant 0 : index
      %c0_16 = arith.constant 0 : index
      %c0_17 = arith.constant 0 : index
      %29 = vector.load %arg9[%c0_15, %c0_16, %c0_17] : memref<1x32x4xf32, #tpu.memory_space<vmem>>, vector<1x32x4xf32>
      %30 = vector.shape_cast %29 : vector<1x32x4xf32> to vector<32x4xf32>
      %31 = arith.truncf %30 : vector<32x4xf32> to vector<32x4xbf16>
      %cst_18 = arith.constant dense<0.000000e+00> : vector<8x4xf32>
      %32 = tpu.matmul %24, %31, %cst_18 {dimension_numbers = #tpu.dot_dimension_numbers<[1], [0], [0], [1], [0, 0, 1, 1], [], []>} : vector<8x32xbf16>, vector<32x4xbf16>, vector<8x4xf32> -> vector<8x4xf32>
      %c0_19 = arith.constant 0 : index
      %c0_20 = arith.constant 0 : index
      %33 = vector.load %arg18[%c0_19, %c0_20] : memref<8x4xf32, #tpu.memory_space<vmem>>, vector<8x4xf32>
      %c0_21 = arith.constant 0 : index
      %c0_22 = arith.constant 0 : index
      %34 = vector.load %arg19[%c0_21, %c0_22] : memref<8x4xf32, #tpu.memory_space<vmem>>, vector<8x4xf32>
      %35 = arith.mulf %28, %33 : vector<8x4xf32>
      %36 = arith.mulf %32, %34 : vector<8x4xf32>
      %37 = arith.subf %35, %36 : vector<8x4xf32>
      %38 = arith.mulf %32, %33 : vector<8x4xf32>
      %39 = arith.mulf %28, %34 : vector<8x4xf32>
      %40 = arith.addf %38, %39 : vector<8x4xf32>
      %c0_23 = arith.constant 0 : index
      %c0_24 = arith.constant 0 : index
      %c0_25 = arith.constant 0 : index
      %41 = vector.load %arg10[%c0_23, %c0_24, %c0_25] : memref<1x32x8xf32, #tpu.memory_space<vmem>>, vector<1x32x8xf32>
      %42 = vector.shape_cast %41 : vector<1x32x8xf32> to vector<32x8xf32>
      %43 = arith.truncf %42 : vector<32x8xf32> to vector<32x8xbf16>
      %cst_26 = arith.constant dense<0.000000e+00> : vector<8x8xf32>
      %44 = tpu.matmul %24, %43, %cst_26 {dimension_numbers = #tpu.dot_dimension_numbers<[1], [0], [0], [1], [0, 0, 1, 1], [], []>} : vector<8x32xbf16>, vector<32x8xbf16>, vector<8x8xf32> -> vector<8x8xf32>
      %c0_27 = arith.constant 0 : index
      %c0_28 = arith.constant 0 : index
      %45 = vector.load %arg21[%c0_27, %c0_28] : memref<8x4xf32, #tpu.memory_space<vmem>>, vector<8x4xf32>
      %46 = arith.truncf %45 : vector<8x4xf32> to vector<8x4xbf16>
      %47 = arith.truncf %37 : vector<8x4xf32> to vector<8x4xbf16>
      %cst_29 = arith.constant dense<0.000000e+00> : vector<8x8xf32>
      %48 = tpu.matmul %46, %47, %cst_29 {dimension_numbers = #tpu.dot_dimension_numbers<[1], [1], [0], [0], [0, 0, 1, 0], [], []>} : vector<8x4xbf16>, vector<8x4xbf16>, vector<8x8xf32> -> vector<8x8xf32>
      %c0_30 = arith.constant 0 : index
      %c0_31 = arith.constant 0 : index
      %49 = vector.load %arg22[%c0_30, %c0_31] : memref<8x4xf32, #tpu.memory_space<vmem>>, vector<8x4xf32>
      %50 = arith.truncf %49 : vector<8x4xf32> to vector<8x4xbf16>
      %51 = arith.truncf %40 : vector<8x4xf32> to vector<8x4xbf16>
      %cst_32 = arith.constant dense<0.000000e+00> : vector<8x8xf32>
      %52 = tpu.matmul %50, %51, %cst_32 {dimension_numbers = #tpu.dot_dimension_numbers<[1], [1], [0], [0], [0, 0, 1, 0], [], []>} : vector<8x4xbf16>, vector<8x4xbf16>, vector<8x8xf32> -> vector<8x8xf32>
      %53 = arith.addf %48, %52 : vector<8x8xf32>
      %c8_i32_33 = arith.constant 8 : i32
      %54 = arith.muli %arg1, %c8_i32_33 : i32
      %55 = tpu.iota {dimensions = array<i32: 0>} : vector<8x8xi32>
      %56 = vector.broadcast %54 : i32 to vector<8x8xi32>
      %57 = arith.addi %56, %55 : vector<8x8xi32>
      %c8_i32_34 = arith.constant 8 : i32
      %58 = arith.muli %arg3, %c8_i32_34 : i32
      %59 = tpu.iota {dimensions = array<i32: 1>} : vector<8x8xi32>
      %60 = vector.broadcast %58 : i32 to vector<8x8xi32>
      %61 = arith.addi %60, %59 : vector<8x8xi32>
      %62 = arith.cmpi sge, %57, %61 : vector<8x8xi32>
      %c0_35 = arith.constant 0 : index
      %c0_36 = arith.constant 0 : index
      %c0_37 = arith.constant 0 : index
      %63 = vector.load %arg15[%c0_35, %c0_36, %c0_37] : memref<1x1x1xf32, #tpu.memory_space<vmem>>, vector<1x1x1xf32>
      %64 = vector.shape_cast %63 : vector<1x1x1xf32> to vector<1x1xf32>
      %65 = arith.subi %57, %61 : vector<8x8xi32>
      %66 = arith.sitofp %65 : vector<8x8xi32> to vector<8x8xf32>
      %cst_38 = arith.constant 0.000000e+00 : f32
      %67 = vector.broadcast %cst_38 : f32 to vector<8x8xf32>
      %68 = arith.select %62, %66, %67 : vector<8x8xi1>, vector<8x8xf32>
      %69 = vector.broadcast %64 : vector<1x1xf32> to vector<8x8xf32>
      %70 = arith.mulf %68, %69 : vector<8x8xf32>
      %71 = math.exp %70 : vector<8x8xf32>
      %cst_39 = arith.constant 0.000000e+00 : f32
      %72 = vector.broadcast %cst_39 : f32 to vector<8x8xf32>
      %73 = arith.select %62, %71, %72 : vector<8x8xi1>, vector<8x8xf32>
      %74 = arith.mulf %53, %73 : vector<8x8xf32>
      %75 = arith.truncf %74 : vector<8x8xf32> to vector<8x8xbf16>
      %c0_40 = arith.constant 0 : index
      %c0_41 = arith.constant 0 : index
      %76 = vector.load %arg23[%c0_40, %c0_41] : memref<8x8xf32, #tpu.memory_space<vmem>>, vector<8x8xf32>
      %77 = arith.truncf %44 : vector<8x8xf32> to vector<8x8xbf16>
      %cst_42 = arith.constant dense<0.000000e+00> : vector<8x8xf32>
      %78 = tpu.matmul %75, %77, %cst_42 {dimension_numbers = #tpu.dot_dimension_numbers<[1], [0], [0], [1], [0, 0, 1, 1], [], []>} : vector<8x8xbf16>, vector<8x8xbf16>, vector<8x8xf32> -> vector<8x8xf32>
      %79 = arith.addf %76, %78 : vector<8x8xf32>
      %c0_43 = arith.constant 0 : index
      %c0_44 = arith.constant 0 : index
      %80 = vector.load %arg23[%c0_43, %c0_44] : memref<8x8xf32, #tpu.memory_space<vmem>>, vector<8x8xf32>
      tpu.vector_store %arg23[%c0_43, %c0_44], %79 {strides = array<i32>} : memref<8x8xf32, #tpu.memory_space<vmem>>, vector<8x8xf32>,
    } else {
    }
    %c0_i32_6 = arith.constant 0 : i32
    %14 = arith.cmpi eq, %arg3, %c0_i32_6 : i32
    %15 = arith.extui %14 : i1 to i32
    %c0_i32_7 = arith.constant 0 : i32
    %16 = arith.cmpi ne, %15, %c0_i32_7 : i32
    scf.if %16 {
      %c0 = arith.constant 0 : index
      %c0_10 = arith.constant 0 : index
      %22 = vector.load %arg23[%c0, %c0_10] : memref<8x8xf32, #tpu.memory_space<vmem>>, vector<8x8xf32>
      %cst = arith.constant dense<0.000000e+00> : vector<8xf32>
      %23 = vector.multi_reduction <add>, %22, %cst [1] : vector<8x8xf32> to vector<8xf32>
      %24 = vector.shape_cast %23 : vector<8xf32> to vector<8x1xf32>
      %cst_11 = arith.constant 8.000000e+00 : f32
      %25 = vector.broadcast %cst_11 : f32 to vector<8x1xf32>
      %26 = arith.divf %24, %25 : vector<8x1xf32>
      %27 = vector.broadcast %26 : vector<8x1xf32> to vector<8x8xf32>
      %28 = arith.subf %22, %27 : vector<8x8xf32>
      %29 = arith.mulf %28, %28 : vector<8x8xf32>
      %cst_12 = arith.constant dense<0.000000e+00> : vector<8xf32>
      %30 = vector.multi_reduction <add>, %29, %cst_12 [1] : vector<8x8xf32> to vector<8xf32>
      %31 = vector.shape_cast %30 : vector<8xf32> to vector<8x1xf32>
      %cst_13 = arith.constant 8.000000e+00 : f32
      %32 = vector.broadcast %cst_13 : f32 to vector<8x1xf32>
      %33 = arith.divf %31, %32 : vector<8x1xf32>
      %34 = vector.broadcast %26 : vector<8x1xf32> to vector<8x8xf32>
      %35 = arith.subf %22, %34 : vector<8x8xf32>
      %cst_14 = arith.constant 9.99999974E-6 : f32
      %36 = vector.broadcast %cst_14 : f32 to vector<8x1xf32>
      %37 = arith.addf %33, %36 : vector<8x1xf32>
      %38 = math.rsqrt %37 : vector<8x1xf32>
      %39 = vector.broadcast %38 : vector<8x1xf32> to vector<8x8xf32>
      %40 = arith.mulf %35, %39 : vector<8x8xf32>
      %c0_15 = arith.constant 0 : index
      %c0_16 = arith.constant 0 : index
      %c0_17 = arith.constant 0 : index
      %41 = vector.load %arg13[%c0_15, %c0_16, %c0_17] : memref<1x1x8xf32, #tpu.memory_space<vmem>>, vector<1x1x8xf32>
      %42 = vector.shape_cast %41 : vector<1x1x8xf32> to vector<1x8xf32>
      %43 = vector.broadcast %42 : vector<1x8xf32> to vector<8x8xf32>
      %44 = arith.mulf %40, %43 : vector<8x8xf32>
      %c0_18 = arith.constant 0 : index
      %c0_19 = arith.constant 0 : index
      %c0_20 = arith.constant 0 : index
      %45 = vector.load %arg14[%c0_18, %c0_19, %c0_20] : memref<1x1x8xf32, #tpu.memory_space<vmem>>, vector<1x1x8xf32>
      %46 = vector.shape_cast %45 : vector<1x1x8xf32> to vector<1x8xf32>
      %47 = vector.broadcast %46 : vector<1x8xf32> to vector<8x8xf32>
      %48 = arith.addf %44, %47 : vector<8x8xf32>
      %c0_21 = arith.constant 0 : index
      %c0_22 = arith.constant 0 : index
      %c0_23 = arith.constant 0 : index
      %49 = vector.load %arg4[%c0_21, %c0_22, %c0_23] : memref<1x8x32xf32, #tpu.memory_space<vmem>>, vector<1x8x32xf32>
      %50 = vector.shape_cast %49 : vector<1x8x32xf32> to vector<8x32xf32>
      %51 = arith.truncf %50 : vector<8x32xf32> to vector<8x32xbf16>
      %c0_24 = arith.constant 0 : index
      %c0_25 = arith.constant 0 : index
      %c0_26 = arith.constant 0 : index
      %52 = vector.load %arg11[%c0_24, %c0_25, %c0_26] : memref<1x32x8xf32, #tpu.memory_space<vmem>>, vector<1x32x8xf32>
      %53 = vector.shape_cast %52 : vector<1x32x8xf32> to vector<32x8xf32>
      %54 = arith.truncf %53 : vector<32x8xf32> to vector<32x8xbf16>
      %cst_27 = arith.constant dense<0.000000e+00> : vector<8x8xf32>
      %55 = tpu.matmul %51, %54, %cst_27 {dimension_numbers = #tpu.dot_dimension_numbers<[1], [0], [0], [1], [0, 0, 1, 1], [], []>} : vector<8x32xbf16>, vector<32x8xbf16>, vector<8x8xf32> -> vector<8x8xf32>
      %56 = arith.negf %55 : vector<8x8xf32>
      %57 = math.exp %56 : vector<8x8xf32>
      %cst_28 = arith.constant 1.000000e+00 : f32
      %58 = vector.broadcast %cst_28 : f32 to vector<8x8xf32>
      %59 = arith.addf %58, %57 : vector<8x8xf32>
      %60 = arith.divf %58, %59 : vector<8x8xf32>
      %61 = arith.mulf %55, %60 : vector<8x8xf32>
      %62 = arith.mulf %61, %48 : vector<8x8xf32>
      %c0_29 = arith.constant 0 : index
      %c0_30 = arith.constant 0 : index
      %63 = vector.load %arg24[%c0_29, %c0_30] : memref<8x32xf32, #tpu.memory_space<vmem>>, vector<8x32xf32>
      %64 = arith.truncf %62 : vector<8x8xf32> to vector<8x8xbf16>
      %c0_31 = arith.constant 0 : index
      %c0_32 = arith.constant 0 : index
      %c0_33 = arith.constant 0 : index
      %65 = vector.load %arg12[%c0_31, %c0_32, %c0_33] : memref<1x8x32xf32, #tpu.memory_space<vmem>>, vector<1x8x32xf32>
      %66 = vector.shape_cast %65 : vector<1x8x32xf32> to vector<8x32xf32>
      %67 = arith.truncf %66 : vector<8x32xf32> to vector<8x32xbf16>
      %cst_34 = arith.constant dense<0.000000e+00> : vector<8x32xf32>
      %68 = tpu.matmul %64, %67, %cst_34 {dimension_numbers = #tpu.dot_dimension_numbers<[1], [0], [0], [1], [0, 0, 1, 1], [], []>} : vector<8x8xbf16>, vector<8x32xbf16>, vector<8x32xf32> -> vector<8x32xf32>
      %69 = arith.addf %63, %68 : vector<8x32xf32>
      %c0_35 = arith.constant 0 : index
      %c0_36 = arith.constant 0 : index
      %70 = vector.load %arg24[%c0_35, %c0_36] : memref<8x32xf32, #tpu.memory_space<vmem>>, vector<8x32xf32>
      tpu.vector_store %arg24[%c0_35, %c0_36], %69 {strides = array<i32>} : memref<8x32xf32, #tpu.memory_space<vmem>>, vector<8x32xf32>,
    } else {
    }
    %c0_i32_8 = arith.constant 0 : i32
    %17 = arith.cmpi eq, %arg3, %c0_i32_8 : i32
    %c3_i32 = arith.constant 3 : i32
    %18 = arith.cmpi eq, %arg2, %c3_i32 : i32
    %19 = arith.andi %17, %18 : i1
    %20 = arith.extui %19 : i1 to i32
    %c0_i32_9 = arith.constant 0 : i32
    %21 = arith.cmpi ne, %20, %c0_i32_9 : i32
    scf.if %21 {
      %c0 = arith.constant 0 : index
      %c0_10 = arith.constant 0 : index
      %22 = vector.load %arg24[%c0, %c0_10] : memref<8x32xf32, #tpu.memory_space<vmem>>, vector<8x32xf32>
      %c0_11 = arith.constant 0 : index
      %c0_12 = arith.constant 0 : index
      %c0_13 = arith.constant 0 : index
      %23 = vector.load %arg20[%c0_11, %c0_12, %c0_13] : memref<1x8x32xf32, #tpu.memory_space<vmem>>, vector<1x8x32xf32>
      %24 = vector.shape_cast %23 : vector<1x8x32xf32> to vector<8x32xf32>
      %25 = vector.shape_cast %22 : vector<8x32xf32> to vector<1x8x32xf32>
      tpu.vector_store %arg20[%c0_11, %c0_12, %c0_13], %25 {strides = array<i32>} : memref<1x8x32xf32, #tpu.memory_space<vmem>>, vector<1x8x32xf32>,
    } else {
    }
    return
  }
  func.func @transform_0(%arg0: i32, %arg1: i32, %arg2: i32, %arg3: i32) -> (i32, i32, i32) {
    %c0_i32 = arith.constant 0 : i32
    %c0_i32_0 = arith.constant 0 : i32
    return %arg0, %arg1, %c0_i32 : i32, i32, i32
  }
  func.func @transform_1(%arg0: i32, %arg1: i32, %arg2: i32, %arg3: i32) -> (i32, i32, i32) {
    %c0_i32 = arith.constant 0 : i32
    %c0_i32_0 = arith.constant 0 : i32
    return %arg0, %arg3, %c0_i32 : i32, i32, i32
  }
  func.func @transform_2(%arg0: i32, %arg1: i32, %arg2: i32, %arg3: i32) -> (i32, i32, i32) {
    %c0_i32 = arith.constant 0 : i32
    %c0_i32_0 = arith.constant 0 : i32
    %c0_i32_1 = arith.constant 0 : i32
    return %arg2, %c0_i32, %c0_i32_0 : i32, i32, i32
  }
  func.func @transform_3(%arg0: i32, %arg1: i32, %arg2: i32, %arg3: i32) -> (i32, i32, i32) {
    %c0_i32 = arith.constant 0 : i32
    %c0_i32_0 = arith.constant 0 : i32
    %c0_i32_1 = arith.constant 0 : i32
    return %arg2, %c0_i32, %c0_i32_0 : i32, i32, i32
  }
  func.func @transform_4(%arg0: i32, %arg1: i32, %arg2: i32, %arg3: i32) -> (i32, i32, i32) {
    %c0_i32 = arith.constant 0 : i32
    %c0_i32_0 = arith.constant 0 : i32
    %c0_i32_1 = arith.constant 0 : i32
    return %arg2, %c0_i32, %c0_i32_0 : i32, i32, i32
  }
  func.func @transform_5(%arg0: i32, %arg1: i32, %arg2: i32, %arg3: i32) -> (i32, i32, i32) {
    %c0_i32 = arith.constant 0 : i32
    %c0_i32_0 = arith.constant 0 : i32
    %c0_i32_1 = arith.constant 0 : i32
    return %arg2, %c0_i32, %c0_i32_0 : i32, i32, i32
  }
  func.func @transform_6(%arg0: i32, %arg1: i32, %arg2: i32, %arg3: i32) -> (i32, i32, i32) {
    %c0_i32 = arith.constant 0 : i32
    %c0_i32_0 = arith.constant 0 : i32
    %c0_i32_1 = arith.constant 0 : i32
    return %arg2, %c0_i32, %c0_i32_0 : i32, i32, i32
  }
  func.func @transform_7(%arg0: i32, %arg1: i32, %arg2: i32, %arg3: i32) -> (i32, i32, i32) {
    %c0_i32 = arith.constant 0 : i32
    %c0_i32_0 = arith.constant 0 : i32
    %c0_i32_1 = arith.constant 0 : i32
    return %arg2, %c0_i32, %c0_i32_0 : i32, i32, i32
  }
  func.func @transform_8(%arg0: i32, %arg1: i32, %arg2: i32, %arg3: i32) -> (i32, i32, i32) {
    %c0_i32 = arith.constant 0 : i32
    %c0_i32_0 = arith.constant 0 : i32
    %c0_i32_1 = arith.constant 0 : i32
    return %arg2, %c0_i32, %c0_i32_0 : i32, i32, i32
  }
  func.func @transform_9(%arg0: i32, %arg1: i32, %arg2: i32, %arg3: i32) -> (i32, i32, i32) {
    %c0_i32 = arith.constant 0 : i32
    %c0_i32_0 = arith.constant 0 : i32
    %c0_i32_1 = arith.constant 0 : i32
    return %arg2, %c0_i32, %c0_i32_0 : i32, i32, i32
  }
  func.func @transform_10(%arg0: i32, %arg1: i32, %arg2: i32, %arg3: i32) -> (i32, i32, i32) {
    %c0_i32 = arith.constant 0 : i32
    %c0_i32_0 = arith.constant 0 : i32
    %c0_i32_1 = arith.constant 0 : i32
    return %arg2, %c0_i32, %c0_i32_0 : i32, i32, i32
  }
  func.func @transform_11(%arg0: i32, %arg1: i32, %arg2: i32, %arg3: i32) -> (i32, i32, i32) {
    %c0_i32 = arith.constant 0 : i32
    %c0_i32_0 = arith.constant 0 : i32
    %c0_i32_1 = arith.constant 0 : i32
    return %arg2, %c0_i32, %c0_i32_0 : i32, i32, i32
  }
  func.func @transform_12(%arg0: i32, %arg1: i32, %arg2: i32, %arg3: i32) -> (i32, i32) {
    %c0_i32 = arith.constant 0 : i32
    %c0_i32_0 = arith.constant 0 : i32
    return %arg1, %c0_i32 : i32, i32
  }
  func.func @transform_13(%arg0: i32, %arg1: i32, %arg2: i32, %arg3: i32) -> (i32, i32) {
    %c0_i32 = arith.constant 0 : i32
    %c0_i32_0 = arith.constant 0 : i32
    return %arg1, %c0_i32 : i32, i32
  }
  func.func @transform_14(%arg0: i32, %arg1: i32, %arg2: i32, %arg3: i32) -> (i32, i32) {
    %c0_i32 = arith.constant 0 : i32
    %c0_i32_0 = arith.constant 0 : i32
    return %arg3, %c0_i32 : i32, i32
  }
  func.func @transform_15(%arg0: i32, %arg1: i32, %arg2: i32, %arg3: i32) -> (i32, i32) {
    %c0_i32 = arith.constant 0 : i32
    %c0_i32_0 = arith.constant 0 : i32
    return %arg3, %c0_i32 : i32, i32
  }
  func.func @transform_16(%arg0: i32, %arg1: i32, %arg2: i32, %arg3: i32) -> (i32, i32, i32) {
    %c0_i32 = arith.constant 0 : i32
    %c0_i32_0 = arith.constant 0 : i32
    return %arg0, %arg1, %c0_i32 : i32, i32, i32
  }
}

</mosaic_0001>

<bundles_post_ra>
// kernel: tpu_custom_call.1
= control target key start
LH: loop header
LB: loop body
LE: loop exit
PB: predicated region body
PF: predicated region fallthrough
CT: control target
= control target key end

     0   :  { %s2448_s0 = inlined_call_operand.vmem [shape: f32[2,8,32], index: 0, kind: input, shape index: {}]   ;;  %s2449_s1 = inlined_call_operand.vmem [shape: f32[2,8,32], index: 1, kind: input, shape index: {}]   ;;  %s2450_s2 = inlined_call_operand.vmem [shape: f32[4,32,4], index: 2, kind: input, shape index: {}]   ;;  %s2451_s3 = inlined_call_operand.vmem [shape: f32[4,32,4], index: 3, kind: input, shape index: {}]   ;;  %s2452_s4 = inlined_call_operand.vmem [shape: f32[4,32,4], index: 4, kind: input, shape index: {}]   ;;  %s2453_s5 = inlined_call_operand.vmem [shape: f32[4,32,4], index: 5, kind: input, shape index: {}]   ;;  %s2454_s6 = inlined_call_operand.vmem [shape: f32[4,32,8], index: 6, kind: input, shape index: {}]   ;;  %s2455_s7 = inlined_call_operand.vmem [shape: f32[4,32,8], index: 7, kind: input, shape index: {}]   ;;  %s2456_s8 = inlined_call_operand.vmem [shape: f32[4,8,32], index: 8, kind: input, shape index: {}]   ;;  %s2457_s9 = inlined_call_operand.vmem [shape: f32[4,1,8], index: 9, kind: input, shape index: {}]   ;;  %s2458_s10 = inlined_call_operand.vmem [shape: f32[4,1,8], index: 10, kind: input, shape index: {}]   ;;  %s2459_s11 = inlined_call_operand.vmem [shape: f32[4,1,1], index: 11, kind: input, shape index: {}]   ;;  %s2460_s12 = inlined_call_operand.vmem [shape: f32[8,4], index: 12, kind: input, shape index: {}]   ;;  %s2461_s13 = inlined_call_operand.vmem [shape: f32[8,4], index: 13, kind: input, shape index: {}]   ;;  %s2462_s14 = inlined_call_operand.vmem [shape: f32[8,4], index: 14, kind: input, shape index: {}]   ;;  %s2463_s15 = inlined_call_operand.vmem [shape: f32[8,4], index: 15, kind: input, shape index: {}]   ;;  %s2464_s16 = inlined_call_operand.hbm [shape: f32[2,8,32], index: 16, kind: output, shape index: {}]  }
   0x1   :  { %2480 = sst [smem:[#allocation22_spill]] %s2448_s0 }
   0x2   :  { %2481 = sst [smem:[#allocation23_spill]] %s2449_s1 }
   0x3   :  { %2482 = sst [smem:[#allocation24_spill]] %s2450_s2 }
   0x4   :  { %2483 = sst [smem:[#allocation25_spill]] %s2451_s3 }
   0x5   :  { %2484 = sst [smem:[#allocation26_spill]] %s2452_s4 }
   0x6   :  { %2485 = sst [smem:[#allocation27_spill]] %s2453_s5 }
   0x7   :  { %2486 = sst [smem:[#allocation28_spill]] %s2454_s6 }
   0x8   :  { %2487 = sst [smem:[#allocation29_spill]] %s2460_s12 }
   0x9   :  { %2488 = sst [smem:[#allocation30_spill]] %s2461_s13 }
   0xa   :  { %2489 = sst [smem:[#allocation31_spill]] %s2462_s14 }
   0xb   :  { %2490 = sst [smem:[#allocation32_spill]] %s2463_s15 }
   0xc   :  { %2491 = sst [smem:[#allocation33_spill]] %s2464_s16 }
   0xd   :  { %21 = vsyncpa [#allocation7], 0 }
   0xe   :  { %23 = vsyncpa [#allocation7 + $0x1], 0  ;;  %s2148_s21 = smov 0   ;;  %s2150_s22 = smov 0  }
   0xf   :  { %s2152_s23 = smov 0   ;;  %s2154_s24 = smov 0  }
  0x10   :  { %s2156_s25 = smov 0   ;;  %s2158_s26 = smov 0  }
  0x11   :  { %s2160_s27 = smov 0   ;;  %s2162_s28 = smov 0  }
  0x12 LB: > { %2492 = sst [smem:[#allocation9_spill]] %s2028_s21  ;;  %s1729_s29 = sadd.s32 4294967295, %s2056_s28   ;;  %s2056_s28 = sphi %s2162_s28, %s29_s28   ;;  %s2052_s27 = sphi %s2160_s27, %s2534_s27   ;;  %s2048_s26 = sphi %s2158_s26, %s2533_s26   ;;  %s2044_s25 = sphi %s2156_s25, %s2532_s25   ;;  %s2040_s24 = sphi %s2154_s24, %s2531_s24   ;;  %s2036_s23 = sphi %s2152_s23, %s2530_s23   ;;  %s2032_s22 = sphi %s2150_s22, %s2529_s22   ;;  %s2028_s21 = sphi %s2148_s21, %s2528_s21  }
  0x13   : > { %2493 = sst [smem:[#allocation10_spill]] %s2032_s22  ;;  %s1730_s30 = sadd.s32 4294967294, %s2056_s28  }
  0x14   : > { %2494 = sst [smem:[#allocation11_spill]] %s2036_s23  ;;  %s47_s0 = sadd.s32 1, %s2048_s26 }
  0x15   : > { %2495 = sst [smem:[#allocation12_spill]] %s2040_s24  ;;  %p49_p0 = scmp.ge.s32.totalorder %s47_s0, 4 }
  0x16   : > { %2496 = sst [smem:[#allocation13_spill]] %s2044_s25  ;;  %s55_s17 = sadd.s32 1, %s2052_s27 }
  0x17   : > { %2497 = sst [smem:[#allocation14_spill]] %s2048_s26  ;;  %p494_p1 = scmp.ne.s32.totalorder %s2036_s23, %s2032_s22 }
  0x18   : > { %2498 = sst [smem:[#allocation15_spill]] %s2052_s27  ;;  %p495_p2 = scmp.eq.s32.totalorder %s1729_s29, 7 }
  0x19   : > { %2499 = sst [smem:[#allocation16_spill]] %s2056_s28  ;;  %s2536_s0 = smov (%p49_p0, %s47_s0), 0 }
  0x1a   : > { %2500 = sst [smem:[#allocation17_spill]] %s2536_s0  ;;  %s2538_s17 = smov (!%p49_p0, %s55_s17), %s2052_s27 }
  0x1b   : > { %p2197_p3 = por %p495_p2, %p494_p1  ;;  %p500_p4 = scmp.ne.s32.totalorder %s2032_s22, %s2028_s21 }
  0x1c   : > { %p57_p5 = scmp.ge.s32.totalorder %s2538_s17, 2  ;;  %p501_p6 = scmp.eq.s32.totalorder %s1730_s30, 7 }
  0x1d   : > { %s2501_s18 = scalar_select %p2197_p3, 1, 0 }
  0x1e   : > { %p1737_p7 = scmp.ge.s32.totalorder %s2056_s28, 1  ;;  %p640_p8 = scmp.lt.s32.totalorder %s2056_s28, 9 }
  0x1f   : > { %2502 = sst [smem:[#allocation18_spill]] %s2501_s18  ;;  %s2540_s17 = smov (%p57_p5, %s2538_s17), 0 }
  0x20   : > { %2503 = sst [smem:[#allocation19_spill]] %s2540_s17  ;;  %p2207_p9 = por %p501_p6, %p500_p4 }
  0x21   : > { %p641_p10 = pnand %p1737_p7, %p640_p8  ;;  %s479_s20 = ssub.s32 %s2052_s27, %s2540_s17 }
  0x22   : > { %s2504_s19 = scalar_select %p2207_p9, 1, 0 }
  0x23   : > { %s484_s29 = sadd.s32 1, %s2036_s23  ;;  %p482_p11 = scmp.eq.s32.totalorder %s479_s20, 0 }
  0x24   : > { %2505 = sst [smem:[#allocation20_spill]] %s2504_s19  ;;  %644 = sbr.rel (%p641_p10) target bundleno = 1226 (0x4ca), region = 84 }
  0x25   : > { %s2215_s0 = scalar_select %p482_p11, %s2036_s23, %s484_s29  }
  0x26   : > { %s2471_s30 = sand.u32 (!%p641_p10), 1, %s2032_s22   ;;  %p758_p12 = scmp.lt.s32.totalorder (!%p641_p10), %s2044_s25, 1 }
  0x27   : > { %2506 = sst [smem:[#allocation21_spill]] %s2215_s0  ;;  %s2221_s26 = sshll.u32 (!%p641_p10), %s2471_s30, 3 }
  0x28   : > { %p772_p13 = scmp.lt.s32.totalorder (!%p641_p10), %s2040_s24, 3  ;;  %p832_p0 = scmp.eq.s32.totalorder (!%p641_p10), %s2040_s24, 0 }
  0x29   : > { %s759_s17 = scalar_select %p758_p12, %s2044_s25, 1  ;;  %vm838_vm0 = vcmask (%p832_p0), 261120   ;;  %v2058_v0 = vmov (%p832_p0), 0.0  }
  0x2a   : > { %s2227_s27 = scalar_select %p772_p13, %s2040_s24, 3  ;;  %839 = vst.msk [vmem:[#allocation5] sm:$0xff] (%p832_p0), %vm838_vm0, %v2058_v0 }
  0x2b   : > { %s1739_s20 = sshll.u32 %s759_s17, 3  ;;  %s2507_s23 = sld [smem:[#allocation22_spill]] }
  0x2c   : > { %s2508_s1 = sld [smem:[#allocation23_spill]]  ;;  %s1774_s16 = sshll.u32 %s2227_s27, 5 }
  0x2d   : > { %s1753_s18 = sshll.u32 %s2227_s27, 3  ;;  %s2509_s2 = sld [smem:[#allocation24_spill]] }
  0x2e   : > { %s2510_s3 = sld [smem:[#allocation25_spill]]  ;;  %s2265_s13 = scalar_lea.vmem %s2455_s7, %s1774_s16 }
  0x2f   : > { %s2511_s4 = sld [smem:[#allocation26_spill]]  ;;  %s2270_s12 = scalar_lea.vmem %s2456_s8, %s1753_s18 }
  0x30   : > { %s2512_s5 = sld [smem:[#allocation27_spill]]  ;;  %s808_s0 = scalar_lea.vmem %s2457_s9, %s2227_s27 }
  0x31   : > { %s2232_s19 = scalar_lea.vmem %s2507_s23, %s1739_s20  ;;  %s2513_s6 = sld [smem:[#allocation28_spill]] }
  0x32   : > { %s2237_s28 = scalar_lea.vmem %s2508_s1, %s1739_s20  ;;  %s811_s30 = scalar_lea.vmem %s2458_s10, %s2227_s27 }
  0x33   : > { %s776_s15 = scalar_lea.vmem %s2509_s2, %s1774_s16  ;;  %s757_s22 = scalar_lea.vmem [#allocation6], %s2221_s26 }
  0x34   : > { %s781_s17 = scalar_lea.vmem %s2510_s3, %s1774_s16  ;;  %837 = sbr.rel (!%p832_p0) target bundleno = 57 (0x39), region = 88 }
  0x35   : > { %s2250_s23 = scalar_lea.vmem %s2511_s4, %s1774_s16 }
  0x36   : > { %s2255_s21 = scalar_lea.vmem %s2512_s5, %s1774_s16 }
  0x37   : > { %s2260_s1 = scalar_lea.vmem %s2513_s6, %s1774_s16  ;;  %s814_s6 = scalar_lea.vmem %s2459_s11, %s2227_s27 }
  0x39 PF: > { %v847_v1 = vld [vmem:[%s776_s15 + $0x10] sm:$0xff]  ;;  %v848_v2 = vld [vmem:[%s776_s15 + $0x18] sm:$0xff]  ;;  %v2059_v4 = vmov 0.0   ;;  %v845_v7 = vld [vmem:[%s776_s15] sm:$0xff]  ;;  %vm2060_vm1 = vmmov 0   ;;  %vm851_vm2 = vcmask 261120  }
  0x3a   : > { %v897_v3 = vld [vmem:[%s781_s17 + $0x10] sm:$0xff]  ;;  %1808 = vmatprep.subr.bf16.mxu0 %v2059_v4  ;;  %1816 = vmatprep.subr.bf16.mxu1 %v2059_v4  ;;  %v850_v5 = vpack.c.bf16 %v848_v2, %v847_v1  ;;  %v898_v6 = vld [vmem:[%s781_s17 + $0x18] sm:$0xff]  ;;  %v846_v8 = vld [vmem:[%s776_s15 + $0x8] sm:$0xff]  ;;  %v2061_v37 = vmov 0   ;;  %s2515_s5 = sld [smem:[#allocation29_spill]]  ;;  %vm946_vm3 = vcmask 31744  }
  0x3b   : > { %v900_v9 = vpack.c.bf16 %v898_v6, %v897_v3  ;;  %v895_v10 = vld [vmem:[%s781_s17] sm:$0xff]  ;;  %v896_v11 = vld [vmem:[%s781_s17 + $0x8] sm:$0xff]  ;;  %1812 = vmatprep.mubr.msk.bf16.mxu0 %vm2060_vm1, %v2059_v4  ;;  %1820 = vmatprep.mubr.msk.bf16.mxu1 %vm2060_vm1, %v2059_v4  ;;  %v849_v12 = vpack.c.bf16 %v846_v8, %v845_v7  ;;  %v965_v15 = vld [vmem:[%s2250_s23 + $0x10] sm:$0xff]  ;;  %s2516_s18 = sld [smem:[#allocation30_spill]]  ;;  %vm1246_vm4 = vcmask 1043456   ;;  %vm952_vm5 = vcmask 64512  }
  0x3c   : > { %1809 = vmatpush3.bf16.msra.mxu0 %v850_v5  ;;  %v843_v13 = vld [vmem:[%s2232_s19] sm:$0xff]  ;;  %v899_v14 = vpack.c.bf16 %v896_v11, %v895_v10  ;;  %v966_v16 = vld [vmem:[%s2250_s23 + $0x18] sm:$0xff]  ;;  %v1015_v17 = vld [vmem:[%s2255_s21 + $0x10] sm:$0xff]  ;;  %1955 = vset.pattern.permute.xlu0 %v2061_v37  ;;  %s2517_s17 = sld [smem:[#allocation31_spill]]  ;;  %953 = vst.msk [vmem:[#allocation4] sm:$0xff] %vm952_vm5, %v2059_v4 }
  0x3d   : > { %1817 = vmatpush3.bf16.msra.mxu1 %v900_v9  ;;  %1810 = vmatprep.subr.bf16.mxu0 %v2059_v4  ;;  %v1016_v18 = vld [vmem:[%s2255_s21 + $0x18] sm:$0xff]  ;;  %v2300_v19 = vpack.c.bf16 %v843_v13, %v843_v13  ;;  %v968_v20 = vpack.c.bf16 %v966_v16, %v965_v15  ;;  %v963_v22 = vld [vmem:[%s2250_s23] sm:$0xff]  ;;  %v964_v23 = vld [vmem:[%s2250_s23 + $0x8] sm:$0xff]  ;;  %s2518_s25 = sld [smem:[#allocation32_spill]] }
  0x3e   : > { %1818 = vmatprep.subr.bf16.mxu1 %v2059_v4  ;;  %v1018_v21 = vpack.c.bf16 %v1016_v18, %v1015_v17  ;;  %v1013_v24 = vld [vmem:[%s2255_s21] sm:$0xff]  ;;  %v1014_v25 = vld [vmem:[%s2255_s21 + $0x8] sm:$0xff]  ;;  %v967_v26 = vpack.c.bf16 %v964_v23, %v963_v22  ;;  %v1069_v30 = vld [vmem:[%s2260_s1 + $0x10] sm:$0xff]  ;;  %v1212_v22 = vlaneseq }
  0x3f   : > { %v961_v27 = vld [vmem:[%s2237_s28] sm:$0xff]  ;;  %v1017_v28 = vpack.c.bf16 %v1014_v25, %v1013_v24  ;;  %v1070_v31 = vld [vmem:[%s2260_s1 + $0x18] sm:$0xff]  ;;  %v1068_v34 = vld [vmem:[%s2260_s1 + $0x8] sm:$0xff] }
  0x40   : > { %1811 = vmatpush3.bf16.msra.mxu0 %v849_v12  ;;  %v962_v29 = vpack.c.bf16 %v961_v27, %v961_v27  ;;  %v1072_v32 = vpack.c.bf16 %v1070_v31, %v1069_v30  ;;  %v1067_v33 = vld [vmem:[%s2260_s1] sm:$0xff]  ;;  %v1213_v23 = vshrl.u32 %v1212_v22, 7  ;;  %v1217_v24 = vand.u32 127, %v1212_v22  ;;  %v1387_v22 = vld [vmem:[#allocation5] sm:$0xff] }
  0x41   : > { %1819 = vmatpush3.bf16.msra.mxu1 %v899_v14  ;;  %1824 = vmatprep.subr.bf16.mxu0 %v2059_v4  ;;  %v1071_v35 = vpack.c.bf16 %v1068_v34, %v1067_v33  ;;  %v1762_v36 = vld [vmem:[%s814_s6] ss:$0 sm:$0xff] }
  0x42   : > { %1832 = vmatprep.subr.bf16.mxu1 %v2059_v4  ;;  %1231 = vperm.xlu0 %1955, %v1762_v36   ;;  %v941_v38 = vld [vmem:[%s2515_s5] sm:$0xff]  ;;  %v1222_v25 = vsub.s32 %v1213_v23, %v1217_v24  ;;  %vm1220_vm6 = vcmp.ge.s32.totalorder %v1213_v23, %v1217_v24 }
  0x43   : > { %1813 = vmatmul.mubr.msk.bf16.vlgmr.msra.gmra.mxu0 %vm851_vm2, %v2300_v19  ;;  %v942_v39 = vld [vmem:[%s2516_s18] sm:$0xff] }
  0x44   : > { %1821 = vmatmul.mubr.msk.bf16.vlgmr.msra.gmra.mxu1 %vm851_vm2, %v2300_v19  ;;  %1825 = vmatpush3.bf16.msra.mxu0 %v968_v20  ;;  %v1059_v53 = vld [vmem:[%s2517_s17] sm:$0xff] }
  0x45   : > { %1833 = vmatpush3.bf16.msra.mxu1 %v1018_v21  ;;  %1826 = vmatprep.subr.bf16.mxu0 %v2059_v4  ;;  %v1060_v54 = vld [vmem:[%s2518_s25] sm:$0xff] }
  0x46   : > { %1834 = vmatprep.subr.bf16.mxu1 %v2059_v4  ;;  %1828 = vmatprep.mubr.msk.bf16.mxu0 %vm2060_vm1, %v2059_v4 }
  0x47   : > { %1836 = vmatprep.mubr.msk.bf16.mxu1 %vm2060_vm1, %v2059_v4 }
  0x48   : > { %1827 = vmatpush3.bf16.msra.mxu0 %v967_v26  ;;  %v1223_v26 = vcvt.s32.f32 %v1222_v25 }
  0x49   : > { %1835 = vmatpush3.bf16.msra.mxu1 %v1017_v28  ;;  %1840 = vmatprep.subr.bf16.mxu0 %v2059_v4 }
  0x4a   : > { %1848 = vmatprep.subr.bf16.mxu1 %v2059_v4  ;;  %v1224_v28 = vsel %vm1220_vm6, %v1223_v26, 0.0 }
  0x4b   : > { %1829 = vmatmul.mubr.msk.bf16.vlgmr.msra.gmra.mxu0 %vm851_vm2, %v962_v29 }
  0x4c   : > { %1837 = vmatmul.mubr.msk.bf16.vlgmr.msra.gmra.mxu1 %vm851_vm2, %v962_v29  ;;  %1844 = vmatprep.mubr.msk.bf16.mxu0 %vm2060_vm1, %v2059_v4 }
  0x4d   : > { %1850 = vmatprep.mubr.msk.bf16.mxu1 %vm2060_vm1, %v2059_v4  ;;  %1841 = vmatpush3.bf16.msra.mxu0 %v1072_v32 }
  0x4e   : > { %1842 = vmatprep.subr.bf16.mxu0 %v2059_v4 }
  0x51   : > { %1843 = vmatpush3.bf16.msra.mxu0 %v1071_v35 }
  0x52   : > { %1854 = vmatprep.subr.bf16.mxu0 %v2059_v4 }
  0x54   : > { %1845 = vmatmul.mubr.msk.bf16.vlgmr.msra.gmra.mxu0 %vm851_vm2, %v962_v29 }
  0x55   : > { %1856 = vmatprep.mubr.msk.bf16.mxu0 %vm2060_vm1, %v2059_v4 }
  0xbd   : > { %v1232_v27 = vpop.permute.xlu0 %1231 }
  0xbe   : > { %v1234_v29 = vmul.f32 %v1232_v27, %v1224_v28 }
  0xc0   : > { %v1235_v30 = vmul.f32 1.442695, %v1234_v29 }
  0xc2   : > { %1956 = vpow2.f32 %v1235_v30 }
  0xcf   : > { %v1957_v31 = vpop.eup %1956 }
  0xd0   : > { %v1237_v34 = vsel %vm1220_vm6, %v1957_v31, 0.0 }
 0x103   : > { %v889_v40 = vpop.f32.mrf.mxu0 }
 0x104   : > { %v943_v41 = vmul.f32 %v941_v38, %v889_v40  ;;  %v949_v42 = vmul.f32 %v942_v39, %v889_v40  ;;  %v935_v43 = vpop.f32.mrf.mxu1 }
 0x105   : > { %v944_v44 = vmul.f32 %v942_v39, %v935_v43  ;;  %v948_v45 = vmul.f32 %v941_v38, %v935_v43  ;;  %v1814_v46 = vpop.f32.mrf.mxu0 }
 0x106   : > { %v1822_v47 = vpop.f32.mrf.mxu1  ;;  %v1329_v46 = vld [vmem:[%s2265_s13] sm:$0xff] }
 0x107   : > { %v945_v48 = vsub.f32 %v943_v41, %v944_v44  ;;  %v950_v49 = vadd.f32 %v949_v42, %v948_v45  ;;  %v892_v50 = vpop.f32.mrf.mxu0  ;;  %v1331_v44 = vld [vmem:[%s2265_s13 + $0x10] sm:$0xff]  ;;  %v1332_v45 = vld [vmem:[%s2265_s13 + $0x18] sm:$0xff] }
 0x108   : > { %v938_v51 = vpop.f32.mrf.mxu1  ;;  %v1334_v47 = vpack.c.bf16 %v1332_v45, %v1331_v44  ;;  %v1240_v50 = vld [vmem:[#allocation4] sm:$0xff] }
 0x109   : > { %947 = vst.msk [vmem:[#allocation2] sm:$0xff] %vm946_vm3, %v945_v48  ;;  %951 = vst.msk [vmem:[#allocation3] sm:$0xff] %vm946_vm3, %v950_v49  ;;  %v1815_v52 = vpop.f32.mrf.mxu0  ;;  %v1330_v48 = vld [vmem:[%s2265_s13 + $0x8] sm:$0xff]  ;;  %s2519_s13 = sld [smem:[#allocation12_spill]] }
 0x10a   : > { %v1823_v55 = vpop.f32.mrf.mxu1  ;;  %v1333_v49 = vpack.c.bf16 %v1330_v48, %v1329_v46 }
 0x10b   : > { %v1007_v56 = vpop.f32.mrf.mxu0 }
 0x10c   : > { %v1061_v57 = vmul.f32 %v1059_v53, %v1007_v56  ;;  %v1065_v58 = vmul.f32 %v1060_v54, %v1007_v56  ;;  %v1053_v59 = vpop.f32.mrf.mxu1 }
 0x10d   : > { %v1062_v60 = vmul.f32 %v1060_v54, %v1053_v59  ;;  %v1064_v61 = vmul.f32 %v1059_v53, %v1053_v59  ;;  %v1830_v62 = vpop.f32.mrf.mxu0 }
 0x10e   : > { %v1838_v63 = vpop.f32.mrf.mxu1 }
 0x10f   : > { %v1063_v0 = vsub.f32 %v1061_v57, %v1062_v60  ;;  %v1066_v1 = vadd.f32 %v1065_v58, %v1064_v61  ;;  %v1010_v2 = vpop.f32.mrf.mxu0  ;;  %p1440_p1 = scmp.eq.s32.totalorder %s2519_s13, 3 }
 0x110   : > { %v1056_v3 = vpop.f32.mrf.mxu1  ;;  %v1116_v11 = vld [vmem:[#allocation3] sm:$0xff]  ;;  %v1113_v12 = vld [vmem:[#allocation2] sm:$0xff] }
 0x111   : > { %v1115_v5 = vpack.c.bf16 %v1063_v0, %v1063_v0  ;;  %v1118_v6 = vpack.c.bf16 %v1066_v1, %v1066_v1  ;;  %v1831_v7 = vpop.f32.mrf.mxu0  ;;  %v1117_v13 = vpack.c.bf16 %v1116_v11, %v1116_v11  ;;  %v1114_v14 = vpack.c.bf16 %v1113_v12, %v1113_v12  ;;  %v1389_v1 = vld [vmem:[%s2270_s12] sm:$0xff] }
 0x112   : > { %v1839_v8 = vpop.f32.mrf.mxu1  ;;  %v1390_v2 = vpack.c.bf16 %v1389_v1, %v1389_v1  ;;  %v1764_v12 = vld [vmem:[%s808_s0] ss:$0 sm:$0xff] }
 0x113   : > { %v1124_v9 = vsel %vm946_vm3, %v1118_v6, 0  ;;  %v1170_v10 = vsel %vm946_vm3, %v1115_v5, 0 }
 0x114   : > { %1849 = vmatpush3.bf16.xpose.msra.mxu1 %v1124_v9  ;;  %1855 = vmatpush3.bf16.xpose.msra.mxu0 %v1170_v10  ;;  %v1107_v15 = vpop.f32.mrf.mxu0  ;;  %v1396_v3 = vsel %vm1246_vm4, %v1390_v2, 0 }
 0x115   : > { %1860 = vmatprep.subr.bf16.mxu1 %v2059_v4  ;;  %1866 = vmatprep.subr.bf16.mxu0 %v2059_v4  ;;  %v1241_v16 = vpack.c.bf16 %v1107_v15, %v1107_v15  ;;  %v1765_v15 = vld [vmem:[%s811_s30] ss:$0 sm:$0xff] }
 0x116   : > { %v1846_v17 = vpop.f32.mrf.mxu0 }
 0x117   : > { %v1248_v18 = vsel %vm1246_vm4, %v1241_v16, 0 }
 0x118   : > { %v1110_v20 = vpop.f32.mrf.mxu0 }
 0x11a   : > { %v1847_v21 = vpop.f32.mrf.mxu0 }
 0x11b   : > { %1851 = vmatmul.mubr.msk.bf16.vlgmr.msra.gmra.mxu1 %vm946_vm3, %v1117_v13  ;;  %1857 = vmatmul.mubr.msk.bf16.vlgmr.msra.gmra.mxu0 %vm946_vm3, %v1114_v14 }
 0x11c   : > { %1862 = vmatprep.mubr.msk.bf16.mxu1 %vm2060_vm1, %v2059_v4  ;;  %1870 = vmatprep.mubr.msk.bf16.mxu0 %vm2060_vm1, %v2059_v4 }
 0x11d   : > { %1861 = vmatpush3.bf16.msra.mxu1 %v1248_v18  ;;  %1867 = vmatpush3.bf16.msra.mxu0 %v1334_v47 }
 0x11e   : > { %1874 = vmatprep.subr.bf16.mxu1 %v2059_v4  ;;  %1868 = vmatprep.subr.bf16.mxu0 %v2059_v4 }
 0x121   : > { %1869 = vmatpush3.bf16.msra.mxu0 %v1333_v49 }
 0x124   : > { %1871 = vmatmul.mubr.msk.bf16.vlgmr.msra.gmra.mxu0 %vm851_vm2, %v2300_v19 }
 0x1db   : > { %v1160_v32 = vpop.f32.mrf.mxu1  ;;  %v1206_v33 = vpop.f32.mrf.mxu0 }
 0x1dc   : > { %v1207_v35 = vadd.f32 %v1206_v33, %v1160_v32 }
 0x1dd   : > { %v1852_v36 = vpop.f32.mrf.mxu1  ;;  %v1858_v37 = vpop.f32.mrf.mxu0 }
 0x1de   : > { %v1238_v38 = vmul.f32 %v1237_v34, %v1207_v35 }
 0x1df   : > { %v1163_v39 = vpop.f32.mrf.mxu1  ;;  %v1209_v40 = vpop.f32.mrf.mxu0 }
 0x1e0   : > { %v1239_v41 = vpack.c.bf16 %v1238_v38, %v1238_v38 }
 0x1e1   : > { %v1853_v42 = vpop.f32.mrf.mxu1  ;;  %v1859_v43 = vpop.f32.mrf.mxu0 }
 0x1e2   : > { %1863 = vmatmul.mubr.msk.bf16.vlgmr.msra.gmra.mxu1 %vm952_vm5, %v1239_v41 }
 0x1e3   : > { %1876 = vmatprep.mubr.msk.bf16.mxu1 %vm2060_vm1, %v2059_v4  ;;  %1875 = vmatpush3.bf16.msra.mxu1 %v1396_v3 }
 0x1e4   : > { %v1373_v58 = vpop.f32.mrf.mxu0 }
 0x1e5   : > { %v1767_v5 = vmul.f32 -1.442695, %v1373_v58 }
 0x1e6   : > { %v1872_v59 = vpop.f32.mrf.mxu0 }
 0x1e7   : > { %1958 = vpow2.f32 %v1767_v5 }
 0x1e8   : > { %v1376_v4 = vpop.f32.mrf.mxu0 }
 0x1ea   : > { %v1873_v60 = vpop.f32.mrf.mxu0 }
 0x1f4   : > { %v1959_v6 = vpop.eup %1958 }
 0x1f5   : > { %v1382_v9 = vadd.f32 1.0, %v1959_v6 }
 0x2a2   : > { %v1284_v51 = vpop.f32.mrf.mxu1 }
 0x2a3   : > { %v1290_v52 = vadd.f32 %v1284_v51, %v1240_v50 }
 0x2a4   : > { %v1864_v53 = vpop.f32.mrf.mxu1 }
 0x2a5   : > { %1291 = vst.msk [vmem:[#allocation4] sm:$0xff] %vm952_vm5, %v1290_v52 }
 0x2a6   : > { %v1287_v54 = vpop.f32.mrf.mxu1 }
 0x2a8   : > { %v1865_v55 = vpop.f32.mrf.mxu1 }
 0x2ac   : > { %v1295_v56 = vld [vmem:[#allocation4] sm:$0xff] }
 0x2ad   : > { %v1297_v57 = vsel %vm952_vm5, %v1295_v56, 0.0 }
 0x2ae   : > { %1298 = vadd.xlane.f32.xlu0 %v1297_v57 }
 0x337   : > { %v1299_v61 = vpop.xlane.xlu0 %1298 }
 0x338   : > { %v1301_v62 = vmul.f32 0.125, %v1299_v61 }
 0x33a   : > { %v1302_v19 = vsub.f32 %v1295_v56, %v1301_v62 }
 0x33c   : > { %v1303_v63 = vmul.f32 %v1302_v19, %v1302_v19 }
 0x33e   : > { %v1304_v0 = vsel %vm952_vm5, %v1303_v63, 0.0 }
 0x33f   : > { %1305 = vadd.xlane.f32.xlu1 %v1304_v0 }
 0x3c8   : > { %v1306_v7 = vpop.xlane.xlu1 %1305 }
 0x3c9   : > { %v1307_v8 = vmul.f32 0.125, %v1306_v7 }
 0x3cb   : > { %v1308_v10 = vadd.f32 1e-05, %v1307_v8 }
 0x3cd   : > { %1960 = vrsqrt.f32 %v1308_v10 }
 0x3ce   : > { %1962 = vrcp.f32 %v1382_v9 }
 0x3da   : > { %v1961_v11 = vpop.eup %1960 }
 0x3db   : > { %v1310_v13 = vmul.f32 %v1961_v11, %v1302_v19  ;;  %v1963_v14 = vpop.eup %1962 }
 0x3dc   : > { %v1385_v17 = vmul.f32 %v1963_v14, %v1373_v58 }
 0x3dd   : > { %v1318_v16 = vmul.f32 %v1764_v12, %v1310_v13 }
 0x3df   : > { %v1326_v18 = vadd.f32 %v1765_v15, %v1318_v16 }
 0x3e1   : > { %v1386_v20 = vmul.f32 %v1385_v17, %v1326_v18 }
 0x3e3   : > { %v1388_v21 = vpack.c.bf16 %v1386_v20, %v1386_v20 }
 0x3e5   : > { %1877 = vmatmul.mubr.msk.bf16.vlgmr.msra.gmra.mxu1 %vm952_vm5, %v1388_v21 }
 0x4a5   : > { %v1432_v23 = vpop.f32.mrf.mxu1 }
 0x4a6   : > { %v1438_v24 = vadd.f32 %v1432_v23, %v1387_v22 }
 0x4a7   : > { %v1878_v25 = vpop.f32.mrf.mxu1  ;;  %1444 = sbr.rel (!%p1440_p1) target bundleno = 1201 (0x4b1), region = 104 }
 0x4a8   : > { %1439 = vst.msk [vmem:[#allocation5] sm:$0xff] %vm851_vm2, %v1438_v24 }
 0x4a9   : > { %v1435_v26 = vpop.f32.mrf.mxu1 }
 0x4ab   : > { %v1879_v27 = vpop.f32.mrf.mxu1 }
 0x4af   : > { %v1445_v28 = vld [vmem:[#allocation5] sm:$0xff] }
 0x4b0   : > { %1447 = vst.msk [vmem:[%s757_s22] sm:$0xff] %vm851_vm2, %v1445_v28 }
 0x4b1 PF: > { %s2520_s27 = sld [smem:[#allocation13_spill]]  ;;  %s1463_s4 = sshll.u32 %s757_s22, 4  ;;  %s1464_s4 = int_to_ptr.vmem [resolvable:$true] %s1463_s4 }
 0x4b2   : > { %s2521_s0 = sld [smem:[#allocation10_spill]]  ;;  %s1964_s28 = scalar_lea.vmem %s1464_s4, 128 }
 0x4b3   : > { %s2523_s3 = sld [smem:[#allocation33_spill]]  ;;  %p1965_p2 = scmp.ne.s32.totalorder %s1464_s4, %s1964_s28 }
 0x4b4   : > { %s2062_s18 = smov [#allocation6]  }
 0x4b5   : > { %p1966_p4 = pnand %p1965_p2, %p2197_p3  ;;  %s1968_s6 = sshll.u32 %s2062_s18, 4  ;;  %s1969_s6 = int_to_ptr.vmem [resolvable:$false] %s1968_s6 }
 0x4b6   : > { %s1970_s19 = scalar_lea.vmem %s1969_s6, 256  ;;  %p1971_p6 = scmp.lt.s32.totalorder %s1464_s4, %s1969_s6 }
 0x4b7   : > { %s1771_s20 = sshll.u32 %s2520_s27, 7  ;;  %p1967_p5 = pneg %p1966_p4 }
 0x4b8   : > { %s2524_s5 = sand.u32 1, %s2521_s0   ;;  %p1972_p7 = scmp.lt.s32.totalorder %s1970_s19, %s1964_s28 }
 0x4b9   : > { %s1461_s1 = scalar_lea.hbm %s2523_s3, %s1771_s20  ;;  %s1449_s15 = scalar_lea.sflag [#allocation7], %s2524_s5 }
 0x4ba   : > { %p1973_p8 = por %p1972_p7, %p1971_p6 }
 0x4bc   : > { %p1974_p10 = pnand %p1973_p8, %p1967_p5 }
 0x4be   : > { %1977 = shalt.err (!%p1974_p10)
}
 0x4bf   : > { %s1978_s17 = scalar_lea.hbm %s1461_s1, 128  ;;  %s1982_s23 = scalar_lea.hbm %s2523_s3, 256 }
 0x4c0   : > { %p1979_p11 = scmp.ne.s32.totalorder %s1461_s1, %s1978_s17  ;;  %p1983_p0 = scmp.lt.s32.totalorder %s1461_s1, %s2523_s3 }
 0x4c1   : > { %p1984_p1 = scmp.lt.s32.totalorder %s1982_s23, %s1978_s17 }
 0x4c2   : > { %p1980_p12 = pnand %p1979_p11, %p2197_p3 }
 0x4c3   : > { %p1985_p2 = por %p1984_p1, %p1983_p0 }
 0x4c4   : > { %p1981_p13 = pneg %p1980_p12 }
 0x4c6   : > { %p1986_p4 = pnand %p1985_p2, %p1981_p13 }
 0x4c8   : > { %1989 = shalt.err (!%p1986_p4)
}
 0x4c9   : > { %1880 = dma.vmem_to_hbm [thread:$0]  (%p2197_p3), %s1464_s4, 128, %s1461_s1, %s1449_s15  }
 0x4ca PF: > { %s2525_s13 = sld [smem:[#allocation16_spill]] }
 0x4cb   : > { %s2526_s14 = sld [smem:[#allocation9_spill]] }
 0x4d0   : > { %p1886_p5 = scmp.ge.s32.totalorder %s2525_s13, 2 }
 0x4d1   : > { %s1475_s12 = sand.u32 1, %s2526_s14  }
 0x4d2   : > { %p1883_p6 = pnand %p1886_p5, %p2207_p9  ;;  %s1476_s29 = scalar_lea.sflag [#allocation7], %s1475_s12 }
 0x4d4   : > { %p1884_p7 = pneg %p1883_p6 }
 0x4d6   : > { %2023 = dma.done.wait (%p1884_p7), %s1476_s29, 128  }
 0x4d7   : > { %2025 = vsyncadd (%p1884_p7), %s1476_s29, 4294967168  ;;  %s29_s28 = sadd.s32 1, %s2525_s13   ;;  %s2528_s21 = sld [smem:[#allocation10_spill]] }
 0x4d8   : > { %p26_p8 = scmp.ge.s32.totalorder %s29_s28, 10   ;;  %s2529_s22 = sld [smem:[#allocation11_spill]] }
 0x4d9   : > { %s2530_s23 = sld [smem:[#allocation21_spill]] }
 0x4da   : > { %s2531_s24 = sld [smem:[#allocation14_spill]]  ;;  %28 = sbr.rel (!%p26_p8) target bundleno = 18 (0x12), region = 184 }
 0x4db   : > { %s2532_s25 = sld [smem:[#allocation15_spill]] }
 0x4dc   : > { %s2533_s26 = sld [smem:[#allocation17_spill]] }
 0x4dd   : > { %s2534_s27 = sld [smem:[#allocation19_spill]] }
 0x4df   :  { %1481 = vsyncpa [#allocation7], 1 }
 0x4e0   :  { %1483 = vsyncpa [#allocation7 + $0x1], 1 }

</bundles_post_ra>
